<compile_context>
chip_gen: v7x
topology: tpu7x:2x2x1
jax: 0.10.0
libtpu: 0.0.40
codegen_flags: <defaults>
</compile_context>

<pallas_src>
import math
from functools import partial

import jax
import jax.numpy as jnp
from jax.experimental import pallas as pl
from jax.experimental.pallas import tpu as pltpu

NUM_SUBSET = 3          # GraphConvolution.num_subset
KT = 9                  # temporal kernel size
PAD = (KT - 1) // 2     # temporal padding
EPS = 1e-5              # BatchNorm eps


# ------------------------- stage 1: graph adjacency GEMM (contracts over V) -------------------------

def graph_gemm_kernel(x_ref, a_ref, out_ref):
    # x_ref:   (1, C_in*T, V)      bf16
    # a_ref:   (3, V, V)           bf16
    # out_ref: (1, 4, C_in*T, V)   bf16  -- slots 0..2 = x @ A_i, slot 3 = x (staged for stage 2)
    x = x_ref[0]
    for i in range(NUM_SUBSET):
        y = jnp.dot(x, a_ref[i], preferred_element_type=jnp.float32)
        out_ref[0, i] = y.astype(out_ref.dtype)
    out_ref[0, NUM_SUBSET] = x


# ---------------- stage 2: fused channel-mix / BN / ReLU / temporal convs / residuals ----------------

def stgcn_fused_kernel(stk_ref, wpre_ref, bg_ref, wt_ref, bt_ref,
                       out_ref, hpad_ref, xpad_ref, *, v_dim):
    f32 = jnp.float32
    c_in = xpad_ref.shape[0]
    tv = out_ref.shape[-1]
    padv = PAD * v_dim

    # rows of `stacked` are [x@A0 ; x@A1 ; x@A2 ; x], each C_in channels, lane-dense (.., T*V)
    stacked = stk_ref[0]                                                    # (4*C_in, T*V) bf16

    # GraphConvolution: 3 subset 1x1 convs + 1x1 gcn residual, BNs + biases folded -> ONE matmul
    h = jnp.dot(wpre_ref[...], stacked, preferred_element_type=f32) + bg_ref[...]
    h = jnp.maximum(h, 0.0)                                                 # GCN ReLU (f32)

    # zero-padded staging buffers for the two 9x1 temporal convolutions (shift == lane slice)
    hpad_ref[...] = jnp.zeros(hpad_ref.shape, hpad_ref.dtype)
    xpad_ref[...] = jnp.zeros(xpad_ref.shape, xpad_ref.dtype)
    hpad_ref[:, pl.ds(padv, tv)] = h.astype(hpad_ref.dtype)
    xpad_ref[:, pl.ds(padv, tv)] = stk_ref[0, pl.ds(NUM_SUBSET * c_in, c_in), :]

    # tap k of a (9,1) conv with pad 4 reads time t + (k - 4): lane slice starting at k*V
    taps = [hpad_ref[:, pl.ds(k * v_dim, tv)] for k in range(KT)]
    taps += [xpad_ref[:, pl.ds(k * v_dim, tv)] for k in range(KT)]
    stack_t = jnp.concatenate(taps, axis=0)                                 # (9*(C_out+C_in), T*V)

    # TemporalConvolution(h) + block-residual TemporalConvolution(x), BNs folded -> ONE matmul
    o = jnp.dot(wt_ref[...], stack_t, preferred_element_type=f32) + bt_ref[...]
    out_ref[0] = jnp.maximum(o, 0.0).astype(out_ref.dtype)                  # block ReLU


# ------------------------------------ parameter folding (glue) ------------------------------------

def _bn_fold(gamma, beta, mean, var):
    # eval-mode BatchNorm2d:  y -> s*y + t
    s = gamma / jnp.sqrt(var + EPS)
    return s, beta - mean * s


def prepare_params(p):
    s1, t1 = _bn_fold(p["bn1_gamma"], p["bn1_beta"], p["bn1_mean"], p["bn1_var"])
    s2, t2 = _bn_fold(p["bn2_gamma"], p["bn2_beta"], p["bn2_mean"], p["bn2_var"])
    s3, t3 = _bn_fold(p["bn3_gamma"], p["bn3_beta"], p["bn3_mean"], p["bn3_var"])
    s4, t4 = _bn_fold(p["bn4_gamma"], p["bn4_beta"], p["bn4_mean"], p["bn4_var"])

    # fused graph channel-mix (3 subsets) + gcn 1x1 residual:  (C_out, 4*C_in)
    w_pre = jnp.concatenate([s1[:, None] * p["Wg"][i] for i in range(NUM_SUBSET)]
                            + [s2[:, None] * p["Wr"]], axis=1)
    bias_g = (s1 * jnp.sum(p["bg"], axis=0) + t1) + (s2 * p["br"] + t2)

    # fused temporal conv on h (9 taps) + block residual on x (9 taps):
    # column blocks ordered k=0..8 (h taps) then k=0..8 (x taps), matching the kernel stack.
    w_t = jnp.concatenate([s3[:, None] * p["Wt"][:, :, k] for k in range(KT)]
                          + [s4[:, None] * p["Wres"][:, :, k] for k in range(KT)], axis=1)
    bias_t = (s3 * p["bt"] + t3) + (s4 * p["bres"] + t4)

    bf16 = jnp.bfloat16
    return (p["A"].astype(bf16), w_pre.astype(bf16), bias_g[:, None].astype(jnp.float32),
            w_t.astype(bf16), bias_t[:, None].astype(jnp.float32))


# ------------------------------------------- forward -------------------------------------------

def st_gcn_block_forward(x, params):
    N, C_in, T, V = x.shape
    C_out = params["Wg"].shape[1]
    TV = T * V
    A, w_pre, bias_g, w_t, bias_t = prepare_params(params)

    x2 = x.reshape(N, C_in * T, V).astype(jnp.bfloat16)       # free view of NCHW

    cparams = pltpu.CompilerParams(dimension_semantics=("parallel",),
                                   vmem_limit_bytes=32 * 1024 * 1024)

    # ---- stage 1: y_i = x.view(C*T, V) @ A_i, with x staged alongside ----
    stacked4 = pl.pallas_call(
        graph_gemm_kernel,
        out_shape=jax.ShapeDtypeStruct((N, NUM_SUBSET + 1, C_in * T, V), jnp.bfloat16),
        grid_spec=pltpu.PrefetchScalarGridSpec(
            num_scalar_prefetch=0,
            grid=(N,),
            in_specs=[pl.BlockSpec((1, C_in * T, V), lambda n: (n, 0, 0)),
                      pl.BlockSpec((NUM_SUBSET, V, V), lambda n: (0, 0, 0))],
            out_specs=pl.BlockSpec((1, NUM_SUBSET + 1, C_in * T, V), lambda n: (n, 0, 0, 0)),
        ),
        compiler_params=cparams,
    )(x2, A)

    # free row-major reinterpretation: (N, 4, C_in*T, V) -> (N, 4*C_in, T*V)
    stacked = stacked4.reshape(N, (NUM_SUBSET + 1) * C_in, TV)

    # ---- stage 2: everything else, fused, lane-dense ----
    out2 = pl.pallas_call(
        partial(stgcn_fused_kernel, v_dim=V),
        out_shape=jax.ShapeDtypeStruct((N, C_out, TV), jnp.float32),
        grid_spec=pltpu.PrefetchScalarGridSpec(
            num_scalar_prefetch=0,
            grid=(N,),
            in_specs=[pl.BlockSpec((1, (NUM_SUBSET + 1) * C_in, TV), lambda n: (n, 0, 0)),
                      pl.BlockSpec(w_pre.shape, lambda n: (0, 0)),
                      pl.BlockSpec(bias_g.shape, lambda n: (0, 0)),
                      pl.BlockSpec(w_t.shape, lambda n: (0, 0)),
                      pl.BlockSpec(bias_t.shape, lambda n: (0, 0))],
            out_specs=pl.BlockSpec((1, C_out, TV), lambda n: (n, 0, 0)),
            scratch_shapes=[pltpu.VMEM((C_out, (T + 2 * PAD) * V), jnp.bfloat16),
                            pltpu.VMEM((C_in, (T + 2 * PAD) * V), jnp.bfloat16)],
        ),
        compiler_params=cparams,
    )(stacked, w_pre, bias_g, w_t, bias_t)

    return out2.reshape(N, C_out, T, V)


# ----------------------------- deterministic init (module-shaped params) -----------------------------

def init_params(key, C_in, C_out, V):
    """Shapes follow the PyTorch module.  Values marked (*) deviate from the module's
    fresh init (which has bg=bt=bres=0, bn1_gamma=1e-6, running stats (0, 1)) so the
    correctness check actually exercises the graph path, the bias folding and the
    running-statistics folding (review correctness concerns)."""
    ks = jax.random.split(key, 13)
    A = jax.random.uniform(ks[0], (NUM_SUBSET, V, V), jnp.float32)                 # np.random.rand
    std_g = math.sqrt(2.0 / (C_out * C_in * 1 * NUM_SUBSET))                       # weights_init bs=3
    Wg = std_g * jax.random.normal(ks[1], (NUM_SUBSET, C_out, C_in), jnp.float32)
    bg = 0.05 * jax.random.normal(ks[2], (NUM_SUBSET, C_out), jnp.float32)         # (*)
    Wr = math.sqrt(2.0 / C_in) * jax.random.normal(ks[3], (C_out, C_in), jnp.float32)
    br = 0.05 * jax.random.normal(ks[4], (C_out,), jnp.float32)
    std_t = math.sqrt(2.0 / (C_out * KT * 1))                                      # kaiming fan_out
    Wt = std_t * jax.random.normal(ks[5], (C_out, C_out, KT), jnp.float32)
    bt = 0.05 * jax.random.normal(ks[6], (C_out,), jnp.float32)                    # (*)
    Wres = std_t * jax.random.normal(ks[7], (C_out, C_in, KT), jnp.float32)
    bres = 0.05 * jax.random.normal(ks[8], (C_out,), jnp.float32)                  # (*)

    def bn_params(k, gamma0):
        kg, kb, km, kv = jax.random.split(k, 4)
        gamma = gamma0 * (1.0 + 0.1 * jax.random.normal(kg, (C_out,), jnp.float32))
        beta = 0.05 * jax.random.normal(kb, (C_out,), jnp.float32)                 # (*)
        mean = 0.1 * jax.random.normal(km, (C_out,), jnp.float32)                  # (*) running mean
        var = 1.0 + 0.2 * jax.random.uniform(kv, (C_out,), jnp.float32)            # (*) running var
        return gamma, beta, mean, var

    bn1 = bn_params(ks[9], 1.0)   # (*) module init gamma=1e-6 would hide the Wg/A path
    bn2 = bn_params(ks[10], 1.0)
    bn3 = bn_params(ks[11], 1.0)
    bn4 = bn_params(ks[12], 1.0)

    return dict(
        A=A, Wg=Wg, bg=bg, Wr=Wr, br=br, Wt=Wt, bt=bt, Wres=Wres, bres=bres,
        bn1_gamma=bn1[0], bn1_beta=bn1[1], bn1_mean=bn1[2], bn1_var=bn1[3],
        bn2_gamma=bn2[0], bn2_beta=bn2[1], bn2_mean=bn2[2], bn2_var=bn2[3],
        bn3_gamma=bn3[0], bn3_beta=bn3[1], bn3_mean=bn3[2], bn3_var=bn3[3],
        bn4_gamma=bn4[0], bn4_beta=bn4[1], bn4_mean=bn4[2], bn4_var=bn4[3])


# ----------------------------- pure-JAX reference (eval-mode module semantics) -----------------------------

def reference_forward(x, p):
    N, C_in, T, V = x.shape

    def bn(y, g, b, m, v):
        return ((y - m[None, :, None, None]) / jnp.sqrt(v[None, :, None, None] + EPS)
                * g[None, :, None, None] + b[None, :, None, None])

    hidden = 0.0
    for i in range(NUM_SUBSET):
        xa = (x.reshape(N, C_in * T, V) @ p["A"][i]).reshape(N, C_in, T, V)
        hidden = hidden + jnp.einsum("oc,nctv->notv", p["Wg"][i], xa) \
                 + p["bg"][i][None, :, None, None]
    hidden = bn(hidden, p["bn1_gamma"], p["bn1_beta"], p["bn1_mean"], p["bn1_var"])
    res_g = bn(jnp.einsum("oc,nctv->notv", p["Wr"], x) + p["br"][None, :, None, None],
               p["bn2_gamma"], p["bn2_beta"], p["bn2_mean"], p["bn2_var"])
    h = jax.nn.relu(hidden + res_g)

    def tconv(y, W, b):
        K = W.shape[-1]
        pad = (K - 1) // 2
        yp = jnp.pad(y, ((0, 0), (0, 0), (pad, pad), (0, 0)))
        out = sum(jnp.einsum("oc,nctv->notv", W[:, :, k], yp[:, :, k:k + y.shape[2], :])
                  for k in range(K))
        return out + b[None, :, None, None]

    tcn = bn(tconv(h, p["Wt"], p["bt"]), p["bn3_gamma"], p["bn3_beta"], p["bn3_mean"], p["bn3_var"])
    resb = bn(tconv(x, p["Wres"], p["bres"]), p["bn4_gamma"], p["bn4_beta"], p["bn4_mean"], p["bn4_var"])
    return jax.nn.relu(tcn + resb)


# ------------------------------------------------ main ------------------------------------------------

if __name__ == "__main__":
    N, C_IN, C_OUT, T, V = 2, 4, 8, 16, 16     # small shapes; graph_dim1 == graph_dim2 == V
    key = jax.random.PRNGKey(0)
    k_x, k_p = jax.random.split(key)
    x = jax.random.normal(k_x, (N, C_IN, T, V), jnp.float32)
    params = init_params(k_p, C_IN, C_OUT, V)

    out = jax.block_until_ready(st_gcn_block_forward(x, params))
    assert out.shape == (N, C_OUT, T, V)

    ref = jax.block_until_ready(reference_forward(x, params))
    max_err = float(jnp.max(jnp.abs(out - ref)))
    # kernel path uses bf16 weights/activations (f32 accumulation); scale tolerance accordingly
    tol = 4e-2 * (1.0 + float(jnp.max(jnp.abs(ref))))
    assert max_err < tol, f"mismatch vs reference: {max_err} (tol {tol})"

    print("KERNEL_OK")
</pallas_src>

<mosaic_0001>
module attributes {stable_mosaic.version = 11 : i64} {
  func.func @graph_gemm_kernel(%arg0: i32, %arg1: memref<1x64x16xbf16, #tpu.memory_space<vmem>>, %arg2: memref<3x16x16xbf16, #tpu.memory_space<vmem>>, %arg3: memref<1x4x64x16xbf16, #tpu.memory_space<vmem>>) attributes {dimension_semantics = [#tpu.dimension_semantics<parallel>], iteration_bounds = array<i64: 2>, scalar_prefetch = 0 : i64, scratch_operands = 0 : i64, tpu.core_type = #tpu.core_type<tc>, window_params = [{transform_indices = @transform_0, window_bounds = array<i64: 1, 64, 16>}, {pipeline_mode = #tpu.pipeline_mode<synchronous>, transform_indices = @transform_1, window_bounds = array<i64: 3, 16, 16>}, {transform_indices = @transform_2, window_bounds = array<i64: 1, 4, 64, 16>}]} {
    %c0 = arith.constant 0 : index
    %c0_0 = arith.constant 0 : index
    %c0_1 = arith.constant 0 : index
    %0 = vector.load %arg1[%c0, %c0_0, %c0_1] : memref<1x64x16xbf16, #tpu.memory_space<vmem>>, vector<1x64x16xbf16>
    %1 = vector.shape_cast %0 : vector<1x64x16xbf16> to vector<64x16xbf16>
    %c0_2 = arith.constant 0 : index
    %c0_3 = arith.constant 0 : index
    %c0_4 = arith.constant 0 : index
    %2 = vector.load %arg2[%c0_2, %c0_3, %c0_4] : memref<3x16x16xbf16, #tpu.memory_space<vmem>>, vector<1x16x16xbf16>
    %3 = vector.shape_cast %2 : vector<1x16x16xbf16> to vector<16x16xbf16>
    %cst = arith.constant dense<0.000000e+00> : vector<64x16xf32>
    %4 = tpu.matmul %1, %3, %cst {dimension_numbers = #tpu.dot_dimension_numbers<[1], [0], [0], [1], [0, 0, 1, 1], [], []>} : vector<64x16xbf16>, vector<16x16xbf16>, vector<64x16xf32> -> vector<64x16xf32>
    %5 = arith.truncf %4 : vector<64x16xf32> to vector<64x16xbf16>
    %c0_5 = arith.constant 0 : index
    %c0_6 = arith.constant 0 : index
    %c0_7 = arith.constant 0 : index
    %c0_8 = arith.constant 0 : index
    %6 = vector.load %arg3[%c0_5, %c0_6, %c0_7, %c0_8] : memref<1x4x64x16xbf16, #tpu.memory_space<vmem>>, vector<1x1x64x16xbf16>
    %7 = vector.shape_cast %6 : vector<1x1x64x16xbf16> to vector<64x16xbf16>
    %8 = vector.shape_cast %5 : vector<64x16xbf16> to vector<1x1x64x16xbf16>
    tpu.vector_store %arg3[%c0_5, %c0_6, %c0_7, %c0_8], %8 {strides = array<i32>} : memref<1x4x64x16xbf16, #tpu.memory_space<vmem>>, vector<1x1x64x16xbf16>,
    %c1 = arith.constant 1 : index
    %c0_9 = arith.constant 0 : index
    %c0_10 = arith.constant 0 : index
    %9 = vector.load %arg2[%c1, %c0_9, %c0_10] : memref<3x16x16xbf16, #tpu.memory_space<vmem>>, vector<1x16x16xbf16>
    %10 = vector.shape_cast %9 : vector<1x16x16xbf16> to vector<16x16xbf16>
    %cst_11 = arith.constant dense<0.000000e+00> : vector<64x16xf32>
    %11 = tpu.matmul %1, %10, %cst_11 {dimension_numbers = #tpu.dot_dimension_numbers<[1], [0], [0], [1], [0, 0, 1, 1], [], []>} : vector<64x16xbf16>, vector<16x16xbf16>, vector<64x16xf32> -> vector<64x16xf32>
    %12 = arith.truncf %11 : vector<64x16xf32> to vector<64x16xbf16>
    %c0_12 = arith.constant 0 : index
    %c1_13 = arith.constant 1 : index
    %c0_14 = arith.constant 0 : index
    %c0_15 = arith.constant 0 : index
    %13 = vector.load %arg3[%c0_12, %c1_13, %c0_14, %c0_15] : memref<1x4x64x16xbf16, #tpu.memory_space<vmem>>, vector<1x1x64x16xbf16>
    %14 = vector.shape_cast %13 : vector<1x1x64x16xbf16> to vector<64x16xbf16>
    %15 = vector.shape_cast %12 : vector<64x16xbf16> to vector<1x1x64x16xbf16>
    tpu.vector_store %arg3[%c0_12, %c1_13, %c0_14, %c0_15], %15 {strides = array<i32>} : memref<1x4x64x16xbf16, #tpu.memory_space<vmem>>, vector<1x1x64x16xbf16>,
    %c2 = arith.constant 2 : index
    %c0_16 = arith.constant 0 : index
    %c0_17 = arith.constant 0 : index
    %16 = vector.load %arg2[%c2, %c0_16, %c0_17] : memref<3x16x16xbf16, #tpu.memory_space<vmem>>, vector<1x16x16xbf16>
    %17 = vector.shape_cast %16 : vector<1x16x16xbf16> to vector<16x16xbf16>
    %cst_18 = arith.constant dense<0.000000e+00> : vector<64x16xf32>
    %18 = tpu.matmul %1, %17, %cst_18 {dimension_numbers = #tpu.dot_dimension_numbers<[1], [0], [0], [1], [0, 0, 1, 1], [], []>} : vector<64x16xbf16>, vector<16x16xbf16>, vector<64x16xf32> -> vector<64x16xf32>
    %19 = arith.truncf %18 : vector<64x16xf32> to vector<64x16xbf16>
    %c0_19 = arith.constant 0 : index
    %c2_20 = arith.constant 2 : index
    %c0_21 = arith.constant 0 : index
    %c0_22 = arith.constant 0 : index
    %20 = vector.load %arg3[%c0_19, %c2_20, %c0_21, %c0_22] : memref<1x4x64x16xbf16, #tpu.memory_space<vmem>>, vector<1x1x64x16xbf16>
    %21 = vector.shape_cast %20 : vector<1x1x64x16xbf16> to vector<64x16xbf16>
    %22 = vector.shape_cast %19 : vector<64x16xbf16> to vector<1x1x64x16xbf16>
    tpu.vector_store %arg3[%c0_19, %c2_20, %c0_21, %c0_22], %22 {strides = array<i32>} : memref<1x4x64x16xbf16, #tpu.memory_space<vmem>>, vector<1x1x64x16xbf16>,
    %c0_23 = arith.constant 0 : index
    %c3 = arith.constant 3 : index
    %c0_24 = arith.constant 0 : index
    %c0_25 = arith.constant 0 : index
    %23 = vector.load %arg3[%c0_23, %c3, %c0_24, %c0_25] : memref<1x4x64x16xbf16, #tpu.memory_space<vmem>>, vector<1x1x64x16xbf16>
    %24 = vector.shape_cast %23 : vector<1x1x64x16xbf16> to vector<64x16xbf16>
    %25 = vector.shape_cast %1 : vector<64x16xbf16> to vector<1x1x64x16xbf16>
    tpu.vector_store %arg3[%c0_23, %c3, %c0_24, %c0_25], %25 {strides = array<i32>} : memref<1x4x64x16xbf16, #tpu.memory_space<vmem>>, vector<1x1x64x16xbf16>,
    return
  }
  func.func @transform_0(%arg0: i32) -> (i32, i32, i32) {
    %c0_i32 = arith.constant 0 : i32
    %c0_i32_0 = arith.constant 0 : i32
    %c0_i32_1 = arith.constant 0 : i32
    return %arg0, %c0_i32, %c0_i32_0 : i32, i32, i32
  }
  func.func @transform_1(%arg0: i32) -> (i32, i32, i32) {
    %c0_i32 = arith.constant 0 : i32
    %c0_i32_0 = arith.constant 0 : i32
    %c0_i32_1 = arith.constant 0 : i32
    %c0_i32_2 = arith.constant 0 : i32
    return %c0_i32, %c0_i32_0, %c0_i32_1 : i32, i32, i32
  }
  func.func @transform_2(%arg0: i32) -> (i32, i32, i32, i32) {
    %c0_i32 = arith.constant 0 : i32
    %c0_i32_0 = arith.constant 0 : i32
    %c0_i32_1 = arith.constant 0 : i32
    %c0_i32_2 = arith.constant 0 : i32
    return %arg0, %c0_i32, %c0_i32_0, %c0_i32_1 : i32, i32, i32, i32
  }
}

</mosaic_0001>

<bundles_post_ra>
// kernel: tpu_custom_call.1
= control target key start
LH: loop header
LB: loop body
LE: loop exit
PB: predicated region body
PF: predicated region fallthrough
CT: control target
= control target key end

     0   :  { %s787_s9 = smov 0   ;;  %s891_s0 = inlined_call_operand.vmem [shape: bf16[2,64,16], index: 0, kind: input, shape index: {}]   ;;  %s892_s1 = inlined_call_operand.vmem [shape: bf16[3,16,16], index: 1, kind: input, shape index: {}]   ;;  %s893_s2 = inlined_call_operand.vmem [shape: bf16[2,4,64,16], index: 2, kind: output, shape index: {}]  }
   0x1 LB: > { %s594_s10 = sadd.s32 4294967295, %s770_s9   ;;  %p598_p0 = scmp.ge.s32.totalorder %s770_s9, 1  ;;  %s770_s9 = sphi %s787_s9, %s12_s9  }
   0x2   : > { %p112_p1 = scmp.lt.s32.totalorder %s770_s9, 3 }
   0x4   : > { %p113_p2 = pnand %p598_p0, %p112_p1 }
   0x5   : > { %v757_v0 = vld [vmem:[%s892_s1] sm:$0xff] (!%p113_p2)   ;;  %p134_p3 = scmp.lt.s32.totalorder (!%p113_p2), %s594_s10, 1  ;;  %v760_v1 = vld [vmem:[%s892_s1 + $0x8] sm:$0xff] (!%p113_p2)   ;;  %v761_v2 = vld [vmem:[%s892_s1 + $0x10] sm:$0xff] (!%p113_p2)   ;;  %vm181_vm0 = vcmask (!%p113_p2), 130048   ;;  %vm291_vm1 = vcmask (!%p113_p2), 125952  }
   0x6   : > { %116 = sbr.rel (%p113_p2) target bundleno = 257 (0x101), region = 28  ;;  %717 = vmatprep.subr.bf16.mxu0 (!%p113_p2), %v757_v0  ;;  %747 = vmatprep.subr.bf16.mxu1 (!%p113_p2), %v757_v0 }
   0x7   : > { %718 = vmatpush3.bf16.msra.mxu0 (!%p113_p2), %v757_v0  ;;  %748 = vmatpush3.bf16.msra.mxu1 (!%p113_p2), %v757_v0 }
   0x8   : > { %727 = vmatprep.subr.bf16.mxu1 (!%p113_p2), %v760_v1  ;;  %737 = vmatprep.subr.bf16.mxu0 (!%p113_p2), %v761_v2 }
   0xd   : > { %s895_s10 = smov (!%p134_p3, %s594_s10), 1 }
   0xe   : > { %s676_s17 = sshll.u32 %s895_s10, 5  ;;  %s677_s18 = sshll.u32 %s895_s10, 7 }
   0xf   : > { %s138_s21 = scalar_lea.vmem %s891_s0, %s676_s17  ;;  %s810_s24 = scalar_lea.vmem %s893_s2, %s677_s18 }
  0x10   : > { %v145_v3 = vld [vmem:[%s138_s21] sm:$0xf]  ;;  %v146_v4 = vld [vmem:[%s138_s21 + $0x4] sm:$0xf]  ;;  %v149_v5 = vld [vmem:[%s138_s21 + $0x10] sm:$0xf] }
  0x11   : > { %v603_v6 = vcombine.low %v145_v3, %v146_v4  ;;  %666 = vst.msk [vmem:[%s810_s24 + $0x60] sm:$0xf] %vm291_vm1, %v145_v3  ;;  %667 = vst.msk [vmem:[%s810_s24 + $0x64] sm:$0xf] %vm291_vm1, %v146_v4  ;;  %v150_v7 = vld [vmem:[%s138_s21 + $0x14] sm:$0xf] }
  0x12   : > { %670 = vst.msk [vmem:[%s810_s24 + $0x70] sm:$0xf] %vm291_vm1, %v149_v5  ;;  %v147_v8 = vld [vmem:[%s138_s21 + $0x8] sm:$0xf]  ;;  %v148_v9 = vld [vmem:[%s138_s21 + $0xc] sm:$0xf]  ;;  %v605_v10 = vcombine.low %v149_v5, %v150_v7 }
  0x13   : > { %671 = vst.msk [vmem:[%s810_s24 + $0x74] sm:$0xf] %vm291_vm1, %v150_v7  ;;  %v604_v11 = vcombine.low %v147_v8, %v148_v9  ;;  %668 = vst.msk [vmem:[%s810_s24 + $0x68] sm:$0xf] %vm291_vm1, %v147_v8  ;;  %v151_v12 = vld [vmem:[%s138_s21 + $0x18] sm:$0xf]  ;;  %719 = vmatprep.mubr.msk.bf16.mxu0 %vm181_vm0, %v603_v6 }
  0x14   : > { %669 = vst.msk [vmem:[%s810_s24 + $0x6c] sm:$0xf] %vm291_vm1, %v148_v9  ;;  %v152_v13 = vld [vmem:[%s138_s21 + $0x1c] sm:$0xf]  ;;  %672 = vst.msk [vmem:[%s810_s24 + $0x78] sm:$0xf] %vm291_vm1, %v151_v12  ;;  %723 = vmatprep.mubr.msk.bf16.mxu1 %vm181_vm0, %v605_v10 }
  0x15   : > { %v606_v14 = vcombine.low %v151_v12, %v152_v13  ;;  %673 = vst.msk [vmem:[%s810_s24 + $0x7c] sm:$0xf] %vm291_vm1, %v152_v13  ;;  %720 = vmatmul.mubr.msk.bf16.vlgmr.msra.gmra.mrb[0].mxu0 %vm181_vm0, %v604_v11 }
  0x16   : > { %738 = vmatpush3.bf16.msra.mxu0 %v761_v2  ;;  %739 = vmatprep.mubr.msk.bf16.mxu0 %vm181_vm0, %v603_v6 }
  0x17   : > { %724 = vmatmul.mubr.msk.bf16.vlgmr.msra.gmra.mrb[0].mxu1 %vm181_vm0, %v606_v14 }
  0x18   : > { %728 = vmatpush3.bf16.msra.mxu1 %v760_v1  ;;  %729 = vmatprep.mubr.msk.bf16.mxu1 %vm181_vm0, %v603_v6 }
  0x1d   : > { %740 = vmatmul.mubr.msk.bf16.vlgmr.msra.gmra.mrb[4].mxu0 %vm181_vm0, %v604_v11 }
  0x1e   : > { %743 = vmatprep.mubr.msk.bf16.mxu0 %vm181_vm0, %v605_v10 }
  0x1f   : > { %730 = vmatmul.mubr.msk.bf16.vlgmr.msra.gmra.mrb[4].mxu1 %vm181_vm0, %v604_v11 }
  0x20   : > { %733 = vmatprep.mubr.msk.bf16.mxu1 %vm181_vm0, %v605_v10 }
  0x25   : > { %744 = vmatmul.mubr.msk.bf16.gmra.mrb[8].mxu0 %vm181_vm0, %v606_v14 }
  0x27   : > { %734 = vmatmul.mubr.msk.bf16.gmra.mrb[8].mxu1 %vm181_vm0, %v606_v14 }
  0xe8   : > { %v721_v15 = vpop.f32.mrb[0].mxu0 }
  0xe9   : > { %v680_v16 = vpack.c.bf16 %v721_v15, %v721_v15  ;;  %v228_v18 = vpop.f32.mrb[1].mxu0 }
  0xea   : > { %v725_v17 = vpop.f32.mrb[0].mxu1  ;;  %v678_v20 = vpack.c.bf16 %v228_v18, %v228_v18  ;;  %v722_v22 = vpop.f32.mrb[2].mxu0 }
  0xeb   : > { %v684_v19 = vpack.c.bf16 %v725_v17, %v725_v17  ;;  %v244_v21 = vpop.f32.mrb[1].mxu1  ;;  %294 = vst.msk [vmem:[%s810_s24 + $0x8] sm:$0xf] %vm291_vm1, %v680_v16  ;;  %v681_v24 = vpack.c.bf16 %v722_v22, %v722_v22  ;;  %v231_v26 = vpop.f32.mrb[3].mxu0 }
  0xec   : > { %v682_v23 = vpack.c.bf16 %v244_v21, %v244_v21  ;;  %v726_v25 = vpop.f32.mrb[2].mxu1  ;;  %292 = vst.msk [vmem:[%s810_s24] sm:$0xf] %vm291_vm1, %v678_v20  ;;  %v679_v28 = vpack.c.bf16 %v231_v26, %v231_v26 }
  0xed   : > { %298 = vst.msk [vmem:[%s810_s24 + $0x18] sm:$0xf] %vm291_vm1, %v684_v19  ;;  %v685_v27 = vpack.c.bf16 %v726_v25, %v726_v25  ;;  %v247_v29 = vpop.f32.mrb[3].mxu1  ;;  %295 = vst.msk [vmem:[%s810_s24 + $0xc] sm:$0xf] %vm291_vm1, %v681_v24 }
  0xee   : > { %296 = vst.msk [vmem:[%s810_s24 + $0x10] sm:$0xf] %vm291_vm1, %v682_v23  ;;  %v683_v30 = vpack.c.bf16 %v247_v29, %v247_v29  ;;  %293 = vst.msk [vmem:[%s810_s24 + $0x4] sm:$0xf] %vm291_vm1, %v679_v28 }
  0xef   : > { %299 = vst.msk [vmem:[%s810_s24 + $0x1c] sm:$0xf] %vm291_vm1, %v685_v27 }
  0xf0   : > { %297 = vst.msk [vmem:[%s810_s24 + $0x14] sm:$0xf] %vm291_vm1, %v683_v30  ;;  %v741_v31 = vpop.f32.mrb[4].mxu0 }
  0xf1   : > { %v696_v33 = vpack.c.bf16 %v741_v31, %v741_v31  ;;  %v458_v34 = vpop.f32.mrb[5].mxu0 }
  0xf2   : > { %v731_v32 = vpop.f32.mrb[4].mxu1  ;;  %v694_v37 = vpack.c.bf16 %v458_v34, %v458_v34  ;;  %v742_v38 = vpop.f32.mrb[6].mxu0 }
  0xf3   : > { %v688_v35 = vpack.c.bf16 %v731_v32, %v731_v32  ;;  %v343_v36 = vpop.f32.mrb[5].mxu1  ;;  %660 = vst.msk [vmem:[%s810_s24 + $0x48] sm:$0xf] %vm291_vm1, %v696_v33  ;;  %v697_v41 = vpack.c.bf16 %v742_v38, %v742_v38  ;;  %v461_v42 = vpop.f32.mrb[7].mxu0 }
  0xf4   : > { %v686_v39 = vpack.c.bf16 %v343_v36, %v343_v36  ;;  %v732_v40 = vpop.f32.mrb[6].mxu1  ;;  %658 = vst.msk [vmem:[%s810_s24 + $0x40] sm:$0xf] %vm291_vm1, %v694_v37  ;;  %v695_v45 = vpack.c.bf16 %v461_v42, %v461_v42 }
  0xf5   : > { %637 = vst.msk [vmem:[%s810_s24 + $0x28] sm:$0xf] %vm291_vm1, %v688_v35  ;;  %v689_v43 = vpack.c.bf16 %v732_v40, %v732_v40  ;;  %v346_v44 = vpop.f32.mrb[7].mxu1  ;;  %661 = vst.msk [vmem:[%s810_s24 + $0x4c] sm:$0xf] %vm291_vm1, %v697_v41 }
  0xf6   : > { %635 = vst.msk [vmem:[%s810_s24 + $0x20] sm:$0xf] %vm291_vm1, %v686_v39  ;;  %v687_v46 = vpack.c.bf16 %v346_v44, %v346_v44  ;;  %659 = vst.msk [vmem:[%s810_s24 + $0x44] sm:$0xf] %vm291_vm1, %v695_v45 }
  0xf7   : > { %638 = vst.msk [vmem:[%s810_s24 + $0x2c] sm:$0xf] %vm291_vm1, %v689_v43 }
  0xf8   : > { %636 = vst.msk [vmem:[%s810_s24 + $0x24] sm:$0xf] %vm291_vm1, %v687_v46  ;;  %v745_v47 = vpop.f32.mrb[8].mxu0 }
  0xf9   : > { %v700_v49 = vpack.c.bf16 %v745_v47, %v745_v47  ;;  %v474_v50 = vpop.f32.mrb[9].mxu0 }
  0xfa   : > { %v735_v48 = vpop.f32.mrb[8].mxu1  ;;  %v698_v53 = vpack.c.bf16 %v474_v50, %v474_v50  ;;  %v746_v54 = vpop.f32.mrb[10].mxu0 }
  0xfb   : > { %v692_v51 = vpack.c.bf16 %v735_v48, %v735_v48  ;;  %v359_v52 = vpop.f32.mrb[9].mxu1  ;;  %664 = vst.msk [vmem:[%s810_s24 + $0x58] sm:$0xf] %vm291_vm1, %v700_v49  ;;  %v701_v57 = vpack.c.bf16 %v746_v54, %v746_v54  ;;  %v477_v58 = vpop.f32.mrb[11].mxu0 }
  0xfc   : > { %v690_v55 = vpack.c.bf16 %v359_v52, %v359_v52  ;;  %v736_v56 = vpop.f32.mrb[10].mxu1  ;;  %662 = vst.msk [vmem:[%s810_s24 + $0x50] sm:$0xf] %vm291_vm1, %v698_v53  ;;  %v699_v61 = vpack.c.bf16 %v477_v58, %v477_v58 }
  0xfd   : > { %641 = vst.msk [vmem:[%s810_s24 + $0x38] sm:$0xf] %vm291_vm1, %v692_v51  ;;  %v693_v59 = vpack.c.bf16 %v736_v56, %v736_v56  ;;  %v362_v60 = vpop.f32.mrb[11].mxu1  ;;  %665 = vst.msk [vmem:[%s810_s24 + $0x5c] sm:$0xf] %vm291_vm1, %v701_v57 }
  0xfe   : > { %639 = vst.msk [vmem:[%s810_s24 + $0x30] sm:$0xf] %vm291_vm1, %v690_v55  ;;  %v691_v62 = vpack.c.bf16 %v362_v60, %v362_v60  ;;  %663 = vst.msk [vmem:[%s810_s24 + $0x54] sm:$0xf] %vm291_vm1, %v699_v61 }
  0xff   : > { %642 = vst.msk [vmem:[%s810_s24 + $0x3c] sm:$0xf] %vm291_vm1, %v693_v59 }
 0x100   : > { %640 = vst.msk [vmem:[%s810_s24 + $0x34] sm:$0xf] %vm291_vm1, %v691_v62 }
 0x101 PF: > { %s12_s9 = sadd.s32 1, %s770_s9  }
 0x102   : > { %p9_p4 = scmp.ge.s32.totalorder %s12_s9, 4  }
 0x104   :  { %11 = sbr.rel (!%p9_p4) target bundleno = 1 (0x1), region = 63 }

</bundles_post_ra>
